<compile_context>
chip_gen: v6e
topology: v6e:2x2x1
jax: 0.10.0
libtpu: 0.0.40
codegen_flags: <defaults>
</compile_context>

<pallas_src>
import math

import jax
import jax.numpy as jnp
from jax.experimental import pallas as pl
from jax.experimental.pallas import tpu as pltpu

N_IN = 13    # raw input features
N_EMB = 3    # bayesian embedding size
HID = 32     # hidden width


def _round_up(n, m):
    return ((n + m - 1) // m) * m


def nnsmall_kernel(x_ref, w_ref, b_ref, b3_ref, o_ref):
    """Feature-major MLP tile: x (32, tb) -> out (1, tb), lane-dense.

    x_ref  : (32, tb)     rows 0..12 = features, rows 13..31 = 0
    w_ref  : (4, 32, 32)  transposed weights W^T (out, in): [w1T_pad, w2T, w21T, w22T]
    b_ref  : (32, 8)      cols 0..3 = b1_eff, b2, b21, b22 ; col 4 = w3
    b3_ref : (1,)         fc3 bias scalar (SMEM)
    o_ref  : (1, tb)      sigmoid output (lane-dense)
    """
    b = b_ref[...]                                   # hoisted: one small vld
    h = x_ref[...]                                   # (32, tb)

    # fc1 (embedding already folded into bias column 0) + relu
    h = jnp.maximum(
        jnp.dot(w_ref[0], h, preferred_element_type=jnp.float32) + b[:, 0:1], 0.0)
    # fc2 + relu
    h = jnp.maximum(
        jnp.dot(w_ref[1], h, preferred_element_type=jnp.float32) + b[:, 1:2], 0.0)
    # fc21 + relu
    h = jnp.maximum(
        jnp.dot(w_ref[2], h, preferred_element_type=jnp.float32) + b[:, 2:3], 0.0)
    # fc22 + relu
    h = jnp.maximum(
        jnp.dot(w_ref[3], h, preferred_element_type=jnp.float32) + b[:, 3:4], 0.0)

    # fc3: per-column dot against the w3 column = VPU mul + XLU sublane reduce
    # (no padded 32x32 matmul, no post-dot slice), result already lane-dense.
    logit = jnp.sum(h * b[:, 4:5], axis=0, keepdims=True) + b3_ref[0]   # (1, tb)

    # sigmoid kept on the EUP via the tanh form (exact identity)
    o_ref[...] = 0.5 * (jnp.tanh(0.5 * logit) + 1.0)


def _pick_tile(batch, batch_tile):
    b_al = _round_up(max(batch, 1), 128)          # lane-aligned batch
    if b_al > batch_tile:
        return batch_tile                          # many tiles: big tile amortizes steps
    if b_al >= 1024:
        return _round_up(b_al // 2, 128)           # >=2 grid steps so both v7x TCs get work
    return b_al                                    # small batch: single step is cheapest


def nnsmall_forward(x, w_packed, bias_cols, b3, *, batch_tile=1024):
    """x: (B, 13) f32 -> (B, 1) f32 sigmoid output. Any B (wrapper pads the batch)."""
    x = x.astype(jnp.float32)
    B = x.shape[0]
    tb = _pick_tile(B, batch_tile)
    n_tiles = (B + tb - 1) // tb
    b_pad = n_tiles * tb

    # Feature-major, zero-padded input slab (32, B_pad): rows 13..31 and batch
    # columns B..B_pad-1 are zeros. One-time layout plumbing in XLA.
    xt = jnp.zeros((HID, b_pad), jnp.float32).at[:N_IN, :B].set(x.T)

    flops = 2 * b_pad * (4 * HID * HID + HID)
    bytes_accessed = 4 * (xt.size + w_packed.size + bias_cols.size + 1 + b_pad)

    out = pl.pallas_call(
        nnsmall_kernel,
        out_shape=jax.ShapeDtypeStruct((1, b_pad), jnp.float32),
        grid_spec=pltpu.PrefetchScalarGridSpec(
            num_scalar_prefetch=0,
            grid=(n_tiles,),
            in_specs=[
                pl.BlockSpec((HID, tb), lambda i: (0, i)),          # x tile (feature-major)
                pl.BlockSpec((4, HID, HID), lambda i: (0, 0, 0)),    # packed W^T stack
                pl.BlockSpec((HID, 8), lambda i: (0, 0)),            # bias / w3 columns
                pl.BlockSpec(memory_space=pltpu.MemorySpace.SMEM),   # fc3 bias scalar
            ],
            out_specs=pl.BlockSpec((1, tb), lambda i: (0, i)),       # lane-dense output
        ),
        compiler_params=pltpu.CompilerParams(
            dimension_semantics=("parallel",),   # batch tiles are independent
        ),
        cost_estimate=pl.CostEstimate(
            flops=flops, transcendentals=b_pad, bytes_accessed=bytes_accessed),
    )(xt, w_packed, bias_cols, b3)

    # (1, B_pad) -> (B, 1): pure reshape (leading dim is 1) + slice off batch pad.
    return out.reshape(b_pad, 1)[:B]


def init_params(key):
    """PyTorch-style init: Linear ~ U(-1/sqrt(fan_in), +), embedding ~ N(0,1)."""
    def linear(k, fan_in, fan_out):
        kw, kb = jax.random.split(k)
        bound = 1.0 / math.sqrt(fan_in)
        # stored as (in, out) => y = x @ W + b
        w = jax.random.uniform(kw, (fan_in, fan_out), jnp.float32, -bound, bound)
        b = jax.random.uniform(kb, (1, fan_out), jnp.float32, -bound, bound)
        return w, b

    keys = jax.random.split(key, 6)
    w1, b1 = linear(keys[0], N_IN + N_EMB, HID)
    w2, b2 = linear(keys[1], HID, HID)
    w21, b21 = linear(keys[2], HID, HID)
    w22, b22 = linear(keys[3], HID, HID)
    w3, b3 = linear(keys[4], HID, 1)
    embedding = jax.random.normal(keys[5], (1, N_EMB), jnp.float32)  # torch.randn(1, 3)
    return embedding, (w1, b1, w2, b2, w21, b21, w22, b22, w3, b3)


def pack_params(embedding, params):
    """Fold the constant embedding into fc1's bias; pack feature-major slabs (once)."""
    w1, b1, w2, b2, w21, b21, w22, b22, w3, b3 = params
    b1_eff = embedding @ w1[N_IN:, :] + b1                              # (1, 32)
    # Transposed (out, in) weights; fc1 columns 13..31 are zero (pad rows are inert).
    w1t = jnp.zeros((HID, HID), jnp.float32).at[:, :N_IN].set(w1[:N_IN, :].T)
    w_packed = jnp.stack([w1t, w2.T, w21.T, w22.T])                      # (4, 32, 32)
    bias_cols = jnp.zeros((HID, 8), jnp.float32)
    bias_cols = bias_cols.at[:, 0].set(b1_eff[0])
    bias_cols = bias_cols.at[:, 1].set(b2[0])
    bias_cols = bias_cols.at[:, 2].set(b21[0])
    bias_cols = bias_cols.at[:, 3].set(b22[0])
    bias_cols = bias_cols.at[:, 4].set(w3[:, 0])
    b3_arr = jnp.asarray(b3, jnp.float32).reshape(1)                     # (1,) for SMEM
    return w_packed, bias_cols, b3_arr


def reference_forward(x, embedding, params):
    """Pure-JAX reference mirroring the PyTorch module (embedding broadcast per row)."""
    w1, b1, w2, b2, w21, b21, w22, b22, w3, b3 = params
    e = jnp.broadcast_to(embedding, (x.shape[0], N_EMB))
    h = jnp.concatenate([x, e], axis=1)
    h = jnp.maximum(h @ w1 + b1, 0.0)
    h = jnp.maximum(h @ w2 + b2, 0.0)
    h = jnp.maximum(h @ w21 + b21, 0.0)
    h = jnp.maximum(h @ w22 + b22, 0.0)
    return jax.nn.sigmoid(h @ w3 + b3)


if __name__ == "__main__":
    key = jax.random.PRNGKey(0)
    k_param, k_x1, k_xb = jax.random.split(key, 3)
    embedding, params = init_params(k_param)
    w_packed, bias_cols, b3 = pack_params(embedding, params)   # once, outside the hot path

    # 1) exact original semantics: batch = 1 (the only shape torch.cat allows)
    x1 = jax.random.normal(k_x1, (1, N_IN), jnp.float32)
    out1 = jax.block_until_ready(nnsmall_forward(x1, w_packed, bias_cols, b3))
    ref1 = reference_forward(x1, embedding, params)
    assert out1.shape == (1, 1)
    assert jnp.allclose(out1, ref1, atol=1e-5, rtol=1e-5)

    # 2) batched path incl. a non-multiple-of-tile batch (wrapper pads & slices)
    xb = jax.random.normal(k_xb, (300, N_IN), jnp.float32)
    outb = jax.block_until_ready(nnsmall_forward(xb, w_packed, bias_cols, b3))
    refb = reference_forward(xb, embedding, params)
    assert outb.shape == (300, 1)
    assert jnp.allclose(outb, refb, atol=1e-5, rtol=1e-5)

    print("KERNEL_OK")
</pallas_src>

<mosaic_0001>
module attributes {stable_mosaic.version = 11 : i64} {
  func.func @nnsmall_kernel(%arg0: i32, %arg1: memref<32x128xf32, #tpu.memory_space<vmem>>, %arg2: memref<4x32x32xf32, #tpu.memory_space<vmem>>, %arg3: memref<32x8xf32, #tpu.memory_space<vmem>>, %arg4: memref<1xf32, #tpu.memory_space<smem>>, %arg5: memref<1x128xf32, #tpu.memory_space<vmem>>) attributes {dimension_semantics = [#tpu.dimension_semantics<parallel>], iteration_bounds = array<i64: 1>, scalar_prefetch = 0 : i64, scratch_operands = 0 : i64, tpu.core_type = #tpu.core_type<tc>, window_params = [{transform_indices = @transform_0, window_bounds = array<i64: 32, 128>}, {pipeline_mode = #tpu.pipeline_mode<synchronous>, transform_indices = @transform_1, window_bounds = array<i64: 4, 32, 32>}, {pipeline_mode = #tpu.pipeline_mode<synchronous>, transform_indices = @transform_2, window_bounds = array<i64: 32, 8>}, {transform_indices = @transform_3, window_bounds = array<i64: 1>}, {transform_indices = @transform_4, window_bounds = array<i64: 1, 128>}]} {
    %c0 = arith.constant 0 : index
    %c0_0 = arith.constant 0 : index
    %0 = vector.load %arg3[%c0, %c0_0] : memref<32x8xf32, #tpu.memory_space<vmem>>, vector<32x8xf32>
    %c0_1 = arith.constant 0 : index
    %c0_2 = arith.constant 0 : index
    %1 = vector.load %arg1[%c0_1, %c0_2] : memref<32x128xf32, #tpu.memory_space<vmem>>, vector<32x128xf32>
    %c0_3 = arith.constant 0 : index
    %c0_4 = arith.constant 0 : index
    %c0_5 = arith.constant 0 : index
    %2 = vector.load %arg2[%c0_3, %c0_4, %c0_5] : memref<4x32x32xf32, #tpu.memory_space<vmem>>, vector<1x32x32xf32>
    %3 = vector.shape_cast %2 : vector<1x32x32xf32> to vector<32x32xf32>
    %cst = arith.constant dense<0.000000e+00> : vector<32x128xf32>
    %4 = tpu.matmul %3, %1, %cst {dimension_numbers = #tpu.dot_dimension_numbers<[1], [0], [0], [1], [0, 0, 1, 1], [], []>} : vector<32x32xf32>, vector<32x128xf32>, vector<32x128xf32> -> vector<32x128xf32>
    %5 = vector.extract_strided_slice %0 {offsets = [0, 0], sizes = [32, 1], strides = [1, 1]} : vector<32x8xf32> to vector<32x1xf32>
    %6 = vector.broadcast %5 : vector<32x1xf32> to vector<32x128xf32>
    %7 = arith.addf %4, %6 : vector<32x128xf32>
    %cst_6 = arith.constant 0.000000e+00 : f32
    %8 = vector.broadcast %cst_6 : f32 to vector<32x128xf32>
    %9 = arith.maximumf %7, %8 : vector<32x128xf32>
    %c1 = arith.constant 1 : index
    %c0_7 = arith.constant 0 : index
    %c0_8 = arith.constant 0 : index
    %10 = vector.load %arg2[%c1, %c0_7, %c0_8] : memref<4x32x32xf32, #tpu.memory_space<vmem>>, vector<1x32x32xf32>
    %11 = vector.shape_cast %10 : vector<1x32x32xf32> to vector<32x32xf32>
    %cst_9 = arith.constant dense<0.000000e+00> : vector<32x128xf32>
    %12 = tpu.matmul %11, %9, %cst_9 {dimension_numbers = #tpu.dot_dimension_numbers<[1], [0], [0], [1], [0, 0, 1, 1], [], []>} : vector<32x32xf32>, vector<32x128xf32>, vector<32x128xf32> -> vector<32x128xf32>
    %13 = vector.extract_strided_slice %0 {offsets = [0, 1], sizes = [32, 1], strides = [1, 1]} : vector<32x8xf32> to vector<32x1xf32>
    %14 = vector.broadcast %13 : vector<32x1xf32> to vector<32x128xf32>
    %15 = arith.addf %12, %14 : vector<32x128xf32>
    %cst_10 = arith.constant 0.000000e+00 : f32
    %16 = vector.broadcast %cst_10 : f32 to vector<32x128xf32>
    %17 = arith.maximumf %15, %16 : vector<32x128xf32>
    %c2 = arith.constant 2 : index
    %c0_11 = arith.constant 0 : index
    %c0_12 = arith.constant 0 : index
    %18 = vector.load %arg2[%c2, %c0_11, %c0_12] : memref<4x32x32xf32, #tpu.memory_space<vmem>>, vector<1x32x32xf32>
    %19 = vector.shape_cast %18 : vector<1x32x32xf32> to vector<32x32xf32>
    %cst_13 = arith.constant dense<0.000000e+00> : vector<32x128xf32>
    %20 = tpu.matmul %19, %17, %cst_13 {dimension_numbers = #tpu.dot_dimension_numbers<[1], [0], [0], [1], [0, 0, 1, 1], [], []>} : vector<32x32xf32>, vector<32x128xf32>, vector<32x128xf32> -> vector<32x128xf32>
    %21 = vector.extract_strided_slice %0 {offsets = [0, 2], sizes = [32, 1], strides = [1, 1]} : vector<32x8xf32> to vector<32x1xf32>
    %22 = vector.broadcast %21 : vector<32x1xf32> to vector<32x128xf32>
    %23 = arith.addf %20, %22 : vector<32x128xf32>
    %cst_14 = arith.constant 0.000000e+00 : f32
    %24 = vector.broadcast %cst_14 : f32 to vector<32x128xf32>
    %25 = arith.maximumf %23, %24 : vector<32x128xf32>
    %c3 = arith.constant 3 : index
    %c0_15 = arith.constant 0 : index
    %c0_16 = arith.constant 0 : index
    %26 = vector.load %arg2[%c3, %c0_15, %c0_16] : memref<4x32x32xf32, #tpu.memory_space<vmem>>, vector<1x32x32xf32>
    %27 = vector.shape_cast %26 : vector<1x32x32xf32> to vector<32x32xf32>
    %cst_17 = arith.constant dense<0.000000e+00> : vector<32x128xf32>
    %28 = tpu.matmul %27, %25, %cst_17 {dimension_numbers = #tpu.dot_dimension_numbers<[1], [0], [0], [1], [0, 0, 1, 1], [], []>} : vector<32x32xf32>, vector<32x128xf32>, vector<32x128xf32> -> vector<32x128xf32>
    %29 = vector.extract_strided_slice %0 {offsets = [0, 3], sizes = [32, 1], strides = [1, 1]} : vector<32x8xf32> to vector<32x1xf32>
    %30 = vector.broadcast %29 : vector<32x1xf32> to vector<32x128xf32>
    %31 = arith.addf %28, %30 : vector<32x128xf32>
    %cst_18 = arith.constant 0.000000e+00 : f32
    %32 = vector.broadcast %cst_18 : f32 to vector<32x128xf32>
    %33 = arith.maximumf %31, %32 : vector<32x128xf32>
    %34 = vector.extract_strided_slice %0 {offsets = [0, 4], sizes = [32, 1], strides = [1, 1]} : vector<32x8xf32> to vector<32x1xf32>
    %35 = vector.broadcast %34 : vector<32x1xf32> to vector<32x128xf32>
    %36 = arith.mulf %33, %35 : vector<32x128xf32>
    %cst_19 = arith.constant dense<0.000000e+00> : vector<128xf32>
    %37 = vector.multi_reduction <add>, %36, %cst_19 [0] : vector<32x128xf32> to vector<128xf32>
    %38 = vector.shape_cast %37 : vector<128xf32> to vector<1x128xf32>
    %c0_20 = arith.constant 0 : index
    %39 = memref.load %arg4[%c0_20] : memref<1xf32, #tpu.memory_space<smem>>
    %40 = vector.broadcast %39 : f32 to vector<1x128xf32>
    %41 = arith.addf %38, %40 : vector<1x128xf32>
    %cst_21 = arith.constant 5.000000e-01 : f32
    %42 = vector.broadcast %cst_21 : f32 to vector<1x128xf32>
    %43 = arith.mulf %42, %41 : vector<1x128xf32>
    %44 = math.tanh %43 : vector<1x128xf32>
    %cst_22 = arith.constant 1.000000e+00 : f32
    %45 = vector.broadcast %cst_22 : f32 to vector<1x128xf32>
    %46 = arith.addf %44, %45 : vector<1x128xf32>
    %cst_23 = arith.constant 5.000000e-01 : f32
    %47 = vector.broadcast %cst_23 : f32 to vector<1x128xf32>
    %48 = arith.mulf %47, %46 : vector<1x128xf32>
    %c0_24 = arith.constant 0 : index
    %c0_25 = arith.constant 0 : index
    %49 = vector.load %arg5[%c0_24, %c0_25] : memref<1x128xf32, #tpu.memory_space<vmem>>, vector<1x128xf32>
    tpu.vector_store %arg5[%c0_24, %c0_25], %48 {strides = array<i32>} : memref<1x128xf32, #tpu.memory_space<vmem>>, vector<1x128xf32>,
    return
  }
  func.func @transform_0(%arg0: i32) -> (i32, i32) {
    %c0_i32 = arith.constant 0 : i32
    %c0_i32_0 = arith.constant 0 : i32
    return %c0_i32, %arg0 : i32, i32
  }
  func.func @transform_1(%arg0: i32) -> (i32, i32, i32) {
    %c0_i32 = arith.constant 0 : i32
    %c0_i32_0 = arith.constant 0 : i32
    %c0_i32_1 = arith.constant 0 : i32
    %c0_i32_2 = arith.constant 0 : i32
    return %c0_i32, %c0_i32_0, %c0_i32_1 : i32, i32, i32
  }
  func.func @transform_2(%arg0: i32) -> (i32, i32) {
    %c0_i32 = arith.constant 0 : i32
    %c0_i32_0 = arith.constant 0 : i32
    %c0_i32_1 = arith.constant 0 : i32
    return %c0_i32, %c0_i32_0 : i32, i32
  }
  func.func @transform_3(%arg0: i32) -> i32 {
    %c0_i32 = arith.constant 0 : i32
    %c0_i32_0 = arith.constant 0 : i32
    return %c0_i32 : i32
  }
  func.func @transform_4(%arg0: i32) -> (i32, i32) {
    %c0_i32 = arith.constant 0 : i32
    %c0_i32_0 = arith.constant 0 : i32
    return %c0_i32, %arg0 : i32, i32
  }
}

</mosaic_0001>

<bundles_post_ra>
// kernel: tpu_custom_call.1
= control target key start
LH: loop header
LB: loop body
LE: loop exit
PB: predicated region body
PF: predicated region fallthrough
CT: control target
= control target key end

     0   :  { %10 = vsyncpa [#allocation4], 0  ;;  %s865_s0 = inlined_call_operand.vmem [shape: f32[32,128], index: 0, kind: input, shape index: {}]   ;;  %s866_s1 = inlined_call_operand.hbm [shape: f32[4,32,32], index: 1, kind: input, shape index: {}]   ;;  %s867_s2 = inlined_call_operand.vmem [shape: f32[32,8], index: 2, kind: input, shape index: {}]   ;;  %s868_s3 = inlined_call_operand.<no memory space> [shape: f32[1], index: 3, kind: input, shape index: {}]   ;;  %s869_s4 = inlined_call_operand.hbm [shape: f32[1,128], index: 4, kind: output, shape index: {}]  }
   0x1   :  { %11 = vsyncpa [#allocation5], 0  ;;  %s754_s15 = smov [#allocation3]  }
   0x2   :  { %s19_s16 = sshll.u32 %s754_s15, 4  ;;  %s20_s16 = int_to_ptr.vmem [resolvable:$true] %s19_s16 }
   0x3   :  { %s718_s17 = scalar_lea.vmem %s20_s16, 2048  ;;  %p723_p1 = scmp.lt.s32.totalorder %s20_s16, %s20_s16 }
   0x4   :  { %p719_p0 = scmp.ne.s32.totalorder %s20_s16, %s718_s17  ;;  %p724_p2 = scmp.lt.s32.totalorder %s718_s17, %s718_s17 }
   0x6   :  { %p725_p3 = por %p724_p2, %p723_p1 }
   0x8   :  { %p726_p4 = pnand %p725_p3, %p719_p0 }
   0xa   :  { %729 = shalt.err (!%p726_p4)
}
   0xb   :  { %s755_s18 = smov 128   ;;  %s756_s19 = smov 8  }
   0xc   :  { %25 = dma.hbm_to_vmem [thread:$0]  %s866_s1, 2048, %s20_s16, [#allocation4], %s755_s18, %s755_s18, %s756_s19  }
   0xd   :  { %750 = dma.done.wait [#allocation4], 2048  }
   0xe   :  { %751 = vsyncadd [#allocation4], 4294965248  ;;  %v757_v0 = vmov 0   ;;  %vm65_vm0 = vcmask 261120   ;;  %v40_v1 = vld [vmem:[%s865_s0 + $0x18] sm:$0xff]  ;;  %v39_v2 = vld [vmem:[%s865_s0 + $0x10] sm:$0xff] }
   0xf   :  { %699 = vset.pattern.permute.xlu1 %v757_v0  ;;  %698 = vset.pattern.permute.xlu0 %v757_v0  ;;  %v41_v3 = vld [vmem:[#allocation3] sm:$0xff]  ;;  %v38_v4 = vld [vmem:[%s865_s0 + $0x8] sm:$0xff]  ;;  %v804_v5 = vld [vmem:[%s867_s2 + $0x18] sm:$0xff]  ;;  %v758_v14 = vmov 1   ;;  %v759_v35 = vmov 2   ;;  %v760_v56 = vmov 3  }
  0x10   :  { %633 = vmatprep.subr.mxu0 %v40_v1  ;;  %641 = vmatprep.mubr.msk.f32.mxu0 %vm65_vm0, %v41_v3  ;;  %v810_v6 = vld [vmem:[%s867_s2 + $0x8] sm:$0xff]  ;;  %v37_v7 = vld [vmem:[%s865_s0] sm:$0xff]  ;;  %v819_v8 = vld [vmem:[%s867_s2 + $0x10] sm:$0xff]  ;;  %v761_v57 = vmov 4   ;;  %s762_s11 = smov [#allocation6]  }
  0x11   :  { %634 = vmatpush3.msra.mxu0 %v40_v1  ;;  %62 = vperm.xlu0 %698, %v804_v5   ;;  %v824_v9 = vld [vmem:[%s867_s2] sm:$0xff]  ;;  %v42_v10 = vld [vmem:[#allocation3 + $0x8] sm:$0xff]  ;;  %v43_v11 = vld [vmem:[#allocation3 + $0x10] sm:$0xff]  ;;  %s576_s12 = sshll.u32 %s762_s11, 4  ;;  %s577_s12 = int_to_ptr.vmem [resolvable:$true] %s576_s12 }
  0x12   :  { %635 = vmatprep.subr.mxu0 %v39_v2  ;;  %52 = vperm.xlu1 %699, %v810_v6   ;;  %v44_v12 = vld [vmem:[#allocation3 + $0x18] sm:$0xff]  ;;  %v168_v13 = vld [vmem:[#allocation3 + $0x20] sm:$0xff]  ;;  %v169_v31 = vld [vmem:[#allocation3 + $0x28] sm:$0xff]  ;;  %s730_s13 = scalar_lea.vmem %s577_s12, 16  ;;  %s734_s14 = scalar_lea.vmem %s577_s12, 32 }
  0x13   :  { %636 = vmatpush3.msra.mxu0 %v39_v2  ;;  %655 = vmatprep.mubr.msk.f32.mxu1 %vm65_vm0, %v168_v13  ;;  %v170_v32 = vld [vmem:[#allocation3 + $0x30] sm:$0xff]  ;;  %v171_v33 = vld [vmem:[#allocation3 + $0x38] sm:$0xff]  ;;  %v290_v34 = vld [vmem:[#allocation3 + $0x40] sm:$0xff]  ;;  %p731_p5 = scmp.ne.s32.totalorder %s577_s12, %s730_s13  ;;  %p735_p6 = scmp.lt.s32.totalorder %s577_s12, %s577_s12 }
  0x14   :  { %637 = vmatprep.subr.mxu0 %v38_v4  ;;  %v291_v52 = vld [vmem:[#allocation3 + $0x48] sm:$0xff]  ;;  %v292_v53 = vld [vmem:[#allocation3 + $0x50] sm:$0xff]  ;;  %v293_v54 = vld [vmem:[#allocation3 + $0x58] sm:$0xff]  ;;  %p736_p7 = scmp.lt.s32.totalorder %s734_s14, %s730_s13 }
  0x15   :  { %638 = vmatpush3.msra.mxu0 %v38_v4  ;;  %57 = vperm.xlu0 %698, %v819_v8   ;;  %v412_v55 = vld [vmem:[#allocation3 + $0x60] sm:$0xff] }
  0x16   :  { %639 = vmatprep.subr.mxu0 %v37_v7  ;;  %47 = vperm.xlu1 %699, %v824_v9   ;;  %p737_p8 = por %p736_p7, %p735_p6 }
  0x17   :  { %640 = vmatpush3.msra.mxu0 %v37_v7 }
  0x18   :  { %642 = vmatmul.mubr.msk.f32.vlgmr.msra.gmra.mxu0 %vm65_vm0, %v42_v10  ;;  %p738_p9 = pnand %p737_p8, %p731_p5 }
  0x19   :  { %644 = vmatprep.mubr.msk.f32.mxu0 %vm65_vm0, %v43_v11  ;;  %700 = vset.pattern.permute.xlu0 %v758_v14  ;;  %v414_v11 = vld [vmem:[#allocation3 + $0x70] sm:$0xff] }
  0x1a   :  { %701 = vset.pattern.permute.xlu1 %v758_v14  ;;  %185 = vperm.xlu0 %700, %v804_v5  }
  0x1b   :  { %181 = vperm.xlu1 %701, %v819_v8  }
  0x1c   :  { %645 = vmatmul.mubr.msk.f32.gmra.mxu0 %vm65_vm0, %v44_v12  ;;  %v415_v12 = vld [vmem:[#allocation3 + $0x78] sm:$0xff] }
  0x1d   :  { %669 = vmatprep.mubr.msk.f32.mxu0 %vm65_vm0, %v290_v34 }
  0x1e   :  { %173 = vperm.xlu0 %700, %v824_v9  }
  0x1f   :  { %177 = vperm.xlu1 %701, %v810_v6  }
  0x22   :  { %703 = vset.pattern.permute.xlu0 %v759_v35 }
  0x23   :  { %702 = vset.pattern.permute.xlu1 %v759_v35  ;;  %303 = vperm.xlu0 %703, %v819_v8  }
  0x24   :  { %307 = vperm.xlu1 %702, %v804_v5  }
  0x27   :  { %704 = vset.pattern.permute.xlu0 %v760_v56 }
  0x28   :  { %299 = vperm.xlu1 %702, %v810_v6   ;;  %417 = vperm.xlu0 %704, %v824_v9  }
  0x2c   :  { %295 = vperm.xlu1 %702, %v824_v9   ;;  %429 = vperm.xlu0 %704, %v804_v5  }
  0x30   :  { %705 = vset.pattern.permute.xlu1 %v760_v56  ;;  %707 = vset.pattern.permute.xlu0 %v761_v57 }
  0x31   :  { %421 = vperm.xlu1 %705, %v810_v6   ;;  %538 = vperm.xlu0 %707, %v810_v6  }
  0x35   :  { %425 = vperm.xlu1 %705, %v819_v8  }
  0x39   :  { %706 = vset.pattern.permute.xlu1 %v761_v57 }
  0x3a   :  { %534 = vperm.xlu1 %706, %v824_v9  }
  0x3e   :  { %542 = vperm.xlu1 %706, %v819_v8   ;;  %v413_v8 = vld [vmem:[#allocation3 + $0x68] sm:$0xff] }
  0x42   :  { %546 = vperm.xlu1 %706, %v804_v5  }
  0x8c   :  { %v63_v15 = vpop.permute.xlu0 %62 }
  0x8d   :  { %v53_v16 = vpop.permute.xlu1 %52 }
  0x90   :  { %v58_v20 = vpop.permute.xlu0 %57 }
  0x91   :  { %v48_v22 = vpop.permute.xlu1 %47 }
  0x95   :  { %v186_v37 = vpop.permute.xlu0 %185 }
  0x96   :  { %v182_v36 = vpop.permute.xlu1 %181 }
  0x99   :  { %v174_v43 = vpop.permute.xlu0 %173 }
  0x9a   :  { %v178_v40 = vpop.permute.xlu1 %177 }
  0x9e   :  { %v304_v63 = vpop.permute.xlu0 %303 }
  0x9f   :  { %v308_v58 = vpop.permute.xlu1 %307 }
  0xa3   :  { %v300_v59 = vpop.permute.xlu1 %299 }
  0xa7   :  { %v296_v1 = vpop.permute.xlu1 %295 }
  0xac   :  { %v422_v13 = vpop.permute.xlu1 %421 }
  0xb0   :  { %v426_v14 = vpop.permute.xlu1 %425 }
  0xd8   :  { %v643_v17 = vpop.f32.mrf.mxu0 }
  0xd9   :  { %v150_v24 = vadd.f32 %v643_v17, %v53_v16  ;;  %v535_v16 = vpop.permute.xlu1 %534 }
  0xda   :  { %v144_v18 = vpop.f32.mrf.mxu0 }
  0xdb   :  { %v145_v27 = vadd.f32 %v144_v18, %v48_v22  ;;  %v164_v29 = vmax.f32 %v150_v24, 0.0 }
  0xdc   :  { %v646_v19 = vpop.f32.mrf.mxu0 }
  0xdd   :  { %v160_v21 = vadd.f32 %v646_v19, %v63_v15  ;;  %v163_v30 = vmax.f32 %v145_v27, 0.0  ;;  %v418_v15 = vpop.permute.xlu0 %417  ;;  %v543_v24 = vpop.permute.xlu1 %542 }
  0xde   :  { %v154_v23 = vpop.f32.mrf.mxu0 }
  0xdf   :  { %v166_v25 = vmax.f32 %v160_v21, 0.0  ;;  %v155_v26 = vadd.f32 %v154_v23, %v58_v20 }
  0xe1   :  { %v165_v28 = vmax.f32 %v155_v26, 0.0  ;;  %647 = vmatprep.subr.mxu1 %v166_v25  ;;  %v430_v17 = vpop.permute.xlu0 %429 }
  0xe2   :  { %648 = vmatpush3.msra.mxu1 %v166_v25 }
  0xe3   :  { %649 = vmatprep.subr.mxu1 %v165_v28 }
  0xe4   :  { %650 = vmatpush3.msra.mxu1 %v165_v28 }
  0xe5   :  { %651 = vmatprep.subr.mxu1 %v164_v29  ;;  %v539_v27 = vpop.permute.xlu0 %538 }
  0xe6   :  { %652 = vmatpush3.msra.mxu1 %v164_v29 }
  0xe7   :  { %653 = vmatprep.subr.mxu1 %v163_v30 }
  0xe8   :  { %654 = vmatpush3.msra.mxu1 %v163_v30 }
  0xe9   :  { %656 = vmatmul.mubr.msk.f32.vlgmr.msra.gmra.mxu1 %vm65_vm0, %v169_v31 }
  0xea   :  { %658 = vmatprep.mubr.msk.f32.mxu1 %vm65_vm0, %v170_v32 }
  0xed   :  { %659 = vmatmul.mubr.msk.f32.gmra.mxu1 %vm65_vm0, %v171_v33 }
  0xee   :  { %683 = vmatprep.mubr.msk.f32.mxu1 %vm65_vm0, %v412_v55 }
 0x1a9   :  { %v657_v38 = vpop.f32.mrf.mxu1 }
 0x1aa   :  { %v272_v45 = vadd.f32 %v657_v38, %v178_v40 }
 0x1ab   :  { %v266_v39 = vpop.f32.mrf.mxu1 }
 0x1ac   :  { %v267_v48 = vadd.f32 %v266_v39, %v174_v43  ;;  %v286_v50 = vmax.f32 %v272_v45, 0.0  ;;  %v563_v45 = vstv %s868_s3 }
 0x1ad   :  { %v660_v41 = vpop.f32.mrf.mxu1 }
 0x1ae   :  { %v282_v42 = vadd.f32 %v660_v41, %v186_v37  ;;  %v285_v51 = vmax.f32 %v267_v48, 0.0 }
 0x1af   :  { %v276_v44 = vpop.f32.mrf.mxu1 }
 0x1b0   :  { %v288_v46 = vmax.f32 %v282_v42, 0.0  ;;  %v277_v47 = vadd.f32 %v276_v44, %v182_v36  ;;  %v547_v36 = vpop.permute.xlu1 %546 }
 0x1b2   :  { %v287_v49 = vmax.f32 %v277_v47, 0.0  ;;  %661 = vmatprep.subr.mxu0 %v288_v46 }
 0x1b3   :  { %662 = vmatpush3.msra.mxu0 %v288_v46 }
 0x1b4   :  { %663 = vmatprep.subr.mxu0 %v287_v49 }
 0x1b5   :  { %664 = vmatpush3.msra.mxu0 %v287_v49 }
 0x1b6   :  { %665 = vmatprep.subr.mxu0 %v286_v50 }
 0x1b7   :  { %666 = vmatpush3.msra.mxu0 %v286_v50 }
 0x1b8   :  { %667 = vmatprep.subr.mxu0 %v285_v51 }
 0x1b9   :  { %668 = vmatpush3.msra.mxu0 %v285_v51 }
 0x1ba   :  { %670 = vmatmul.mubr.msk.f32.vlgmr.msra.gmra.mxu0 %vm65_vm0, %v291_v52 }
 0x1bb   :  { %672 = vmatprep.mubr.msk.f32.mxu0 %vm65_vm0, %v292_v53 }
 0x1be   :  { %673 = vmatmul.mubr.msk.f32.gmra.mxu0 %vm65_vm0, %v293_v54 }
 0x27a   :  { %v671_v60 = vpop.f32.mrf.mxu0 }
 0x27b   :  { %v394_v3 = vadd.f32 %v671_v60, %v300_v59 }
 0x27c   :  { %v388_v61 = vpop.f32.mrf.mxu0 }
 0x27d   :  { %v389_v10 = vadd.f32 %v388_v61, %v296_v1  ;;  %v408_v6 = vmax.f32 %v394_v3, 0.0 }
 0x27e   :  { %v674_v62 = vpop.f32.mrf.mxu0 }
 0x27f   :  { %v404_v0 = vadd.f32 %v674_v62, %v308_v58  ;;  %v407_v5 = vmax.f32 %v389_v10, 0.0 }
 0x280   :  { %v398_v2 = vpop.f32.mrf.mxu0 }
 0x281   :  { %v410_v4 = vmax.f32 %v404_v0, 0.0  ;;  %v399_v7 = vadd.f32 %v398_v2, %v304_v63 }
 0x283   :  { %v409_v9 = vmax.f32 %v399_v7, 0.0  ;;  %675 = vmatprep.subr.mxu1 %v410_v4 }
 0x284   :  { %676 = vmatpush3.msra.mxu1 %v410_v4 }
 0x285   :  { %677 = vmatprep.subr.mxu1 %v409_v9 }
 0x286   :  { %678 = vmatpush3.msra.mxu1 %v409_v9 }
 0x287   :  { %679 = vmatprep.subr.mxu1 %v408_v6 }
 0x288   :  { %680 = vmatpush3.msra.mxu1 %v408_v6 }
 0x289   :  { %681 = vmatprep.subr.mxu1 %v407_v5 }
 0x28a   :  { %682 = vmatpush3.msra.mxu1 %v407_v5 }
 0x28b   :  { %684 = vmatmul.mubr.msk.f32.vlgmr.msra.gmra.mxu1 %vm65_vm0, %v413_v8 }
 0x28c   :  { %686 = vmatprep.mubr.msk.f32.mxu1 %vm65_vm0, %v414_v11 }
 0x28f   :  { %687 = vmatmul.mubr.msk.f32.gmra.mxu1 %vm65_vm0, %v415_v12 }
 0x34b   :  { %v685_v18 = vpop.f32.mrf.mxu1 }
 0x34c   :  { %v516_v19 = vadd.f32 %v685_v18, %v422_v13 }
 0x34d   :  { %v510_v20 = vpop.f32.mrf.mxu1 }
 0x34e   :  { %v511_v21 = vadd.f32 %v510_v20, %v418_v15  ;;  %v530_v23 = vmax.f32 %v516_v19, 0.0 }
 0x34f   :  { %v688_v22 = vpop.f32.mrf.mxu1 }
 0x350   :  { %v529_v25 = vmax.f32 %v511_v21, 0.0  ;;  %v526_v26 = vadd.f32 %v688_v22, %v430_v17  ;;  %v550_v31 = vmul.f32 %v539_v27, %v530_v23 }
 0x351   :  { %v520_v28 = vpop.f32.mrf.mxu1 }
 0x352   :  { %v549_v29 = vmul.f32 %v535_v16, %v529_v25  ;;  %v521_v30 = vadd.f32 %v520_v28, %v426_v14  ;;  %v532_v32 = vmax.f32 %v526_v26, 0.0 }
 0x354   :  { %v531_v33 = vmax.f32 %v521_v30, 0.0  ;;  %v553_v34 = vadd.f32 %v550_v31, %v549_v29  ;;  %v552_v37 = vmul.f32 %v547_v36, %v532_v32 }
 0x356   :  { %v551_v35 = vmul.f32 %v543_v24, %v531_v33 }
 0x358   :  { %v554_v38 = vadd.f32 %v553_v34, %v551_v35 }
 0x35a   :  { %v555_v39 = vadd.f32 %v554_v38, %v552_v37 }
 0x35c   :  { %v556_v40 = vrot.slane %v555_v39, 4 }
 0x35e   :  { %v557_v41 = vadd.f32 %v556_v40, %v555_v39 }
 0x360   :  { %v558_v42 = vrot.slane %v557_v41, 2 }
 0x362   :  { %v559_v43 = vadd.f32 %v558_v42, %v557_v41 }
 0x364   :  { %v560_v44 = vrot.slane %v559_v43, 1 }
 0x366   :  { %v561_v46 = vadd.f32 %v560_v44, %v559_v43 }
 0x368   :  { %v564_v47 = vadd.f32 %v563_v45, %v561_v46 }
 0x36a   :  { %v565_v48 = vmul.f32 0.5, %v564_v47 }
 0x36c   :  { %708 = vtanh.f32 %v565_v48 }
 0x379   :  { %v709_v49 = vpop.eup %708 }
 0x37a   :  { %v567_v50 = vadd.f32 1.0, %v709_v49 }
 0x37c   :  { %v568_v51 = vmul.f32 0.5, %v567_v50 }
 0x37e   :  { %569 = vst [vmem:[#allocation6] sm:$0x1] %v568_v51 }
 0x37f   :  { %741 = shalt.err (!%p738_p9)
}
 0x380   :  { %579 = dma.vmem_to_hbm [thread:$0]  %s577_s12, 16, %s869_s4, [#allocation5]  }
 0x381   :  { %752 = dma.done.wait [#allocation5], 16  }
 0x382   :  { %753 = vsyncadd [#allocation5], 4294967280 }
 0x383   :  { %583 = vsyncpa [#allocation4], 1 }
 0x384   :  { %584 = vsyncpa [#allocation5], 1 }

</bundles_post_ra>
